<compile_context>
chip_gen: v7x
topology: tpu7x:2x2x1
jax: 0.10.0
libtpu: 0.0.40
codegen_flags: <defaults>
</compile_context>

<pallas_src>
import functools
import math

import jax
import jax.numpy as jnp
import numpy as np
from jax.experimental import pallas as pl
from jax.experimental.pallas import tpu as pltpu

# ---- configuration (consistent with the PyTorch module defaults) ------------
BATCH = 2
FIELD = 8
EMBED = 32
N_HEADS = 2
ATT_D = EMBED // N_HEADS          # att_embed_size
USE_RES = True
SCALING = False


def _interact_kernel(x_ref, wf_ref, o_ref, *, bt, field, embed, n_heads,
                     att_d, use_res, scaling):
    """One batch block: `bt` batch elements folded into the sublane (row) dim.

    x_ref : (bt*field, embed)   rows are batch-major, field-minor
    wf_ref: (embed, 4*embed)    [W_Q.T | W_K.T | W_V.T | W_Res]
    o_ref : (bt*field, embed)
    """
    x = x_ref[...]

    # Single fused projection: N = 4*embed = 128 lanes (one full MXU tile
    # column); weights arrive pre-transposed so there is no in-kernel XLU work.
    proj = jnp.dot(x, wf_ref[...],
                   preferred_element_type=jnp.float32)        # (bt*F, 4E)

    # Gather per-(batch, head) Q/K/V tiles onto a leading axis so the score /
    # softmax / attention ops are batched across all heads and batch elements
    # (static, trace-time unrolled slicing; no batch mixing in the scores).
    q_l, k_l, v_l = [], [], []
    for b in range(bt):
        r0 = b * field
        for h in range(n_heads):
            c0 = h * att_d
            q_l.append(proj[r0:r0 + field, c0:c0 + att_d])
            k_l.append(proj[r0:r0 + field, embed + c0:embed + c0 + att_d])
            v_l.append(proj[r0:r0 + field, 2 * embed + c0:2 * embed + c0 + att_d])
    q = jnp.stack(q_l)                                        # (bt*H, F, D)
    k = jnp.stack(k_l)
    v = jnp.stack(v_l)

    scores = jnp.einsum('nfd,ngd->nfg', q, k,
                        preferred_element_type=jnp.float32)   # (bt*H, F, F)
    if scaling:
        scores = scores * jnp.float32(1.0 / math.sqrt(att_d))

    # Numerically stable softmax over the last axis (matches F.softmax);
    # reciprocal on the EUP (its own VLIW slot).
    scores = scores - jnp.max(scores, axis=-1, keepdims=True)
    p = jnp.exp(scores)
    p = p * pl.reciprocal(jnp.sum(p, axis=-1, keepdims=True), approx=True)

    attn = jnp.einsum('nfg,ngd->nfd', p, v,
                      preferred_element_type=jnp.float32)     # (bt*H, F, D)

    # Re-assemble (bt*F, E): heads back along lanes, batches back along rows.
    rows = []
    for b in range(bt):
        rows.append(jnp.concatenate(
            [attn[b * n_heads + h] for h in range(n_heads)], axis=-1))
    out = jnp.concatenate(rows, axis=0)                       # (bt*F, E)

    if use_res:
        # Residual projection came out of the same fused matmul (x @ W_Res).
        out = out + proj[:, 3 * embed:4 * embed]

    o_ref[...] = jnp.maximum(out, 0.0).astype(o_ref.dtype)


def interact_layer(x, w_q, w_k, w_v, w_res, *, n_heads=N_HEADS,
                   use_res=USE_RES, scaling=SCALING, batch_block=None):
    B, F, E = x.shape
    att_d = E // n_heads

    # Fuse [W_Q.T | W_K.T | W_V.T | W_Res] into one (E, 4E) weight in the
    # wrapper (one-time host-side work).  W_Q/W_K/W_V are nn.Linear weights
    # (applied as x @ W.T); W_Res is applied WITHOUT transpose, as in forward().
    w_res_blk = w_res if use_res else jnp.zeros((E, E), x.dtype)
    w_fused = jnp.concatenate([w_q.T, w_k.T, w_v.T, w_res_blk], axis=1)

    # Fold batch rows into the sublane dim; block the batch for large B
    # (here B=2 -> single grid step handles the whole batch).
    bt = B if batch_block is None else min(batch_block, B)
    assert B % bt == 0, "batch_block must divide batch for this demo"
    grid = (B // bt,)

    x_flat = x.reshape(B * F, E)

    kernel = functools.partial(
        _interact_kernel, bt=bt, field=F, embed=E, n_heads=n_heads,
        att_d=att_d, use_res=use_res, scaling=scaling)

    out_flat = pl.pallas_call(
        kernel,
        out_shape=jax.ShapeDtypeStruct((B * F, E), x.dtype),
        grid_spec=pltpu.PrefetchScalarGridSpec(
            num_scalar_prefetch=0,
            grid=grid,
            in_specs=[
                pl.BlockSpec((bt * F, E), lambda i: (i, 0)),    # x rows (batch block)
                pl.BlockSpec((E, 4 * E), lambda i: (0, 0)),     # fused weight, resident
            ],
            out_specs=pl.BlockSpec((bt * F, E), lambda i: (i, 0)),
        ),
        compiler_params=pltpu.CompilerParams(
            dimension_semantics=("parallel",)),
    )(x_flat, w_fused)

    return out_flat.reshape(B, F, E)


def interact_layer_ref(x, w_q, w_k, w_v, w_res):
    """Pure-JAX reference mirroring the PyTorch forward exactly."""
    B, F, E = x.shape
    Q = x @ w_q.T
    K = x @ w_k.T
    V = x @ w_v.T
    Q = Q.reshape(B, F, N_HEADS, ATT_D).transpose(0, 2, 1, 3)
    K = K.reshape(B, F, N_HEADS, ATT_D).transpose(0, 2, 1, 3)
    V = V.reshape(B, F, N_HEADS, ATT_D).transpose(0, 2, 1, 3)
    scores = Q @ jnp.swapaxes(K, -1, -2)
    if SCALING:
        scores = scores / (ATT_D ** 0.5)
    p = jax.nn.softmax(scores, axis=-1)
    out = (p @ V).transpose(0, 2, 1, 3).reshape(B, F, N_HEADS * ATT_D)
    if USE_RES:
        out = out + x @ w_res
    return jnp.maximum(out, 0.0)


if __name__ == "__main__":
    key = jax.random.PRNGKey(0)
    kx, kq, kk, kv, kr = jax.random.split(key, 5)

    # deterministic inputs; weights mimic normal_(mean=0, std=0.05) init
    x = jax.random.normal(kx, (BATCH, FIELD, EMBED), dtype=jnp.float32)
    w_q = 0.05 * jax.random.normal(kq, (EMBED, EMBED), dtype=jnp.float32)
    w_k = 0.05 * jax.random.normal(kk, (EMBED, EMBED), dtype=jnp.float32)
    w_v = 0.05 * jax.random.normal(kv, (EMBED, EMBED), dtype=jnp.float32)
    w_res = 0.05 * jax.random.normal(kr, (EMBED, EMBED), dtype=jnp.float32)

    out = interact_layer(x, w_q, w_k, w_v, w_res)
    out = jax.block_until_ready(out)

    ref = interact_layer_ref(x, w_q, w_k, w_v, w_res)
    assert out.shape == (BATCH, FIELD, EMBED)
    # tolerance relaxed slightly for the approx (EUP) softmax reciprocal
    assert np.allclose(np.asarray(out), np.asarray(ref), atol=2e-3, rtol=2e-3)

    print("KERNEL_OK")
</pallas_src>

<mosaic_0001>
module attributes {stable_mosaic.version = 11 : i64} {
  func.func @_interact_kernel(%arg0: i32, %arg1: memref<16x32xf32, #tpu.memory_space<vmem>>, %arg2: memref<32x128xf32, #tpu.memory_space<vmem>>, %arg3: memref<16x32xf32, #tpu.memory_space<vmem>>) attributes {dimension_semantics = [#tpu.dimension_semantics<parallel>], iteration_bounds = array<i64: 1>, scalar_prefetch = 0 : i64, scratch_operands = 0 : i64, tpu.core_type = #tpu.core_type<tc>, window_params = [{transform_indices = @transform_0, window_bounds = array<i64: 16, 32>}, {pipeline_mode = #tpu.pipeline_mode<synchronous>, transform_indices = @transform_1, window_bounds = array<i64: 32, 128>}, {transform_indices = @transform_2, window_bounds = array<i64: 16, 32>}]} {
    %c0 = arith.constant 0 : index
    %c0_0 = arith.constant 0 : index
    %0 = vector.load %arg1[%c0, %c0_0] : memref<16x32xf32, #tpu.memory_space<vmem>>, vector<16x32xf32>
    %c0_1 = arith.constant 0 : index
    %c0_2 = arith.constant 0 : index
    %1 = vector.load %arg2[%c0_1, %c0_2] : memref<32x128xf32, #tpu.memory_space<vmem>>, vector<32x128xf32>
    %cst = arith.constant dense<0.000000e+00> : vector<16x128xf32>
    %2 = tpu.matmul %0, %1, %cst {dimension_numbers = #tpu.dot_dimension_numbers<[1], [0], [0], [1], [0, 0, 1, 1], [], []>} : vector<16x32xf32>, vector<32x128xf32>, vector<16x128xf32> -> vector<16x128xf32>
    %3 = vector.extract_strided_slice %2 {offsets = [0, 0], sizes = [8, 16], strides = [1, 1]} : vector<16x128xf32> to vector<8x16xf32>
    %4 = vector.extract_strided_slice %2 {offsets = [0, 32], sizes = [8, 16], strides = [1, 1]} : vector<16x128xf32> to vector<8x16xf32>
    %5 = vector.extract_strided_slice %2 {offsets = [0, 64], sizes = [8, 16], strides = [1, 1]} : vector<16x128xf32> to vector<8x16xf32>
    %6 = vector.extract_strided_slice %2 {offsets = [0, 16], sizes = [8, 16], strides = [1, 1]} : vector<16x128xf32> to vector<8x16xf32>
    %7 = vector.extract_strided_slice %2 {offsets = [0, 48], sizes = [8, 16], strides = [1, 1]} : vector<16x128xf32> to vector<8x16xf32>
    %8 = vector.extract_strided_slice %2 {offsets = [0, 80], sizes = [8, 16], strides = [1, 1]} : vector<16x128xf32> to vector<8x16xf32>
    %9 = vector.extract_strided_slice %2 {offsets = [8, 0], sizes = [8, 16], strides = [1, 1]} : vector<16x128xf32> to vector<8x16xf32>
    %10 = vector.extract_strided_slice %2 {offsets = [8, 32], sizes = [8, 16], strides = [1, 1]} : vector<16x128xf32> to vector<8x16xf32>
    %11 = vector.extract_strided_slice %2 {offsets = [8, 64], sizes = [8, 16], strides = [1, 1]} : vector<16x128xf32> to vector<8x16xf32>
    %12 = vector.extract_strided_slice %2 {offsets = [8, 16], sizes = [8, 16], strides = [1, 1]} : vector<16x128xf32> to vector<8x16xf32>
    %13 = vector.extract_strided_slice %2 {offsets = [8, 48], sizes = [8, 16], strides = [1, 1]} : vector<16x128xf32> to vector<8x16xf32>
    %14 = vector.extract_strided_slice %2 {offsets = [8, 80], sizes = [8, 16], strides = [1, 1]} : vector<16x128xf32> to vector<8x16xf32>
    %15 = vector.shape_cast %3 : vector<8x16xf32> to vector<1x8x16xf32>
    %16 = vector.shape_cast %6 : vector<8x16xf32> to vector<1x8x16xf32>
    %17 = vector.shape_cast %9 : vector<8x16xf32> to vector<1x8x16xf32>
    %18 = vector.shape_cast %12 : vector<8x16xf32> to vector<1x8x16xf32>
    %19 = tpu.concatenate %15, %16, %17, %18 in 0 : vector<1x8x16xf32>, vector<1x8x16xf32>, vector<1x8x16xf32>, vector<1x8x16xf32> -> vector<4x8x16xf32>
    %20 = vector.shape_cast %4 : vector<8x16xf32> to vector<1x8x16xf32>
    %21 = vector.shape_cast %7 : vector<8x16xf32> to vector<1x8x16xf32>
    %22 = vector.shape_cast %10 : vector<8x16xf32> to vector<1x8x16xf32>
    %23 = vector.shape_cast %13 : vector<8x16xf32> to vector<1x8x16xf32>
    %24 = tpu.concatenate %20, %21, %22, %23 in 0 : vector<1x8x16xf32>, vector<1x8x16xf32>, vector<1x8x16xf32>, vector<1x8x16xf32> -> vector<4x8x16xf32>
    %25 = vector.shape_cast %5 : vector<8x16xf32> to vector<1x8x16xf32>
    %26 = vector.shape_cast %8 : vector<8x16xf32> to vector<1x8x16xf32>
    %27 = vector.shape_cast %11 : vector<8x16xf32> to vector<1x8x16xf32>
    %28 = vector.shape_cast %14 : vector<8x16xf32> to vector<1x8x16xf32>
    %29 = tpu.concatenate %25, %26, %27, %28 in 0 : vector<1x8x16xf32>, vector<1x8x16xf32>, vector<1x8x16xf32>, vector<1x8x16xf32> -> vector<4x8x16xf32>
    "tpu.trace_start"() <{level = 10 : i32, message = "nfd,ngd->nfg"}> : () -> ()
    %cst_3 = arith.constant dense<0.000000e+00> : vector<4x8x8xf32>
    %30 = tpu.matmul %19, %24, %cst_3 {dimension_numbers = #tpu.dot_dimension_numbers<[2], [2], [1], [1], [0, 0, 0, 1, 1, 1], [0], [0]>} : vector<4x8x16xf32>, vector<4x8x16xf32>, vector<4x8x8xf32> -> vector<4x8x8xf32>
    "tpu.trace_stop"() : () -> ()
    %cst_4 = arith.constant dense<0xFF800000> : vector<4x8xf32>
    %31 = vector.multi_reduction <maximumf>, %30, %cst_4 [2] : vector<4x8x8xf32> to vector<4x8xf32>
    %32 = vector.shape_cast %31 : vector<4x8xf32> to vector<4x8x1xf32>
    %33 = vector.broadcast %32 : vector<4x8x1xf32> to vector<4x8x8xf32>
    %34 = arith.subf %30, %33 : vector<4x8x8xf32>
    %35 = math.exp %34 : vector<4x8x8xf32>
    %cst_5 = arith.constant dense<0.000000e+00> : vector<4x8xf32>
    %36 = vector.multi_reduction <add>, %35, %cst_5 [2] : vector<4x8x8xf32> to vector<4x8xf32>
    %37 = vector.shape_cast %36 : vector<4x8xf32> to vector<4x8x1xf32>
    %38 = tpu.reciprocal %37 {approx = true} : vector<4x8x1xf32> -> vector<4x8x1xf32>
    %39 = vector.broadcast %38 : vector<4x8x1xf32> to vector<4x8x8xf32>
    %40 = arith.mulf %35, %39 : vector<4x8x8xf32>
    "tpu.trace_start"() <{level = 10 : i32, message = "nfg,ngd->nfd"}> : () -> ()
    %cst_6 = arith.constant dense<0.000000e+00> : vector<4x8x16xf32>
    %41 = tpu.matmul %40, %29, %cst_6 {dimension_numbers = #tpu.dot_dimension_numbers<[2], [1], [1], [2], [0, 0, 0, 1, 1, 2], [0], [0]>} : vector<4x8x8xf32>, vector<4x8x16xf32>, vector<4x8x16xf32> -> vector<4x8x16xf32>
    "tpu.trace_stop"() : () -> ()
    %42 = vector.extract_strided_slice %41 {offsets = [0, 0, 0], sizes = [1, 8, 16], strides = [1, 1, 1]} : vector<4x8x16xf32> to vector<1x8x16xf32>
    %43 = vector.shape_cast %42 : vector<1x8x16xf32> to vector<8x16xf32>
    %44 = vector.extract_strided_slice %41 {offsets = [1, 0, 0], sizes = [1, 8, 16], strides = [1, 1, 1]} : vector<4x8x16xf32> to vector<1x8x16xf32>
    %45 = vector.shape_cast %44 : vector<1x8x16xf32> to vector<8x16xf32>
    %46 = tpu.concatenate %43, %45 in 1 : vector<8x16xf32>, vector<8x16xf32> -> vector<8x32xf32>
    %47 = vector.extract_strided_slice %41 {offsets = [2, 0, 0], sizes = [1, 8, 16], strides = [1, 1, 1]} : vector<4x8x16xf32> to vector<1x8x16xf32>
    %48 = vector.shape_cast %47 : vector<1x8x16xf32> to vector<8x16xf32>
    %49 = vector.extract_strided_slice %41 {offsets = [3, 0, 0], sizes = [1, 8, 16], strides = [1, 1, 1]} : vector<4x8x16xf32> to vector<1x8x16xf32>
    %50 = vector.shape_cast %49 : vector<1x8x16xf32> to vector<8x16xf32>
    %51 = tpu.concatenate %48, %50 in 1 : vector<8x16xf32>, vector<8x16xf32> -> vector<8x32xf32>
    %52 = tpu.concatenate %46, %51 in 0 : vector<8x32xf32>, vector<8x32xf32> -> vector<16x32xf32>
    %53 = vector.extract_strided_slice %2 {offsets = [0, 96], sizes = [16, 32], strides = [1, 1]} : vector<16x128xf32> to vector<16x32xf32>
    %54 = arith.addf %52, %53 : vector<16x32xf32>
    %cst_7 = arith.constant 0.000000e+00 : f32
    %55 = vector.broadcast %cst_7 : f32 to vector<16x32xf32>
    %56 = arith.maximumf %54, %55 : vector<16x32xf32>
    %c0_8 = arith.constant 0 : index
    %c0_9 = arith.constant 0 : index
    %57 = vector.load %arg3[%c0_8, %c0_9] : memref<16x32xf32, #tpu.memory_space<vmem>>, vector<16x32xf32>
    tpu.vector_store %arg3[%c0_8, %c0_9], %56 {strides = array<i32>} : memref<16x32xf32, #tpu.memory_space<vmem>>, vector<16x32xf32>,
    return
  }
  func.func @transform_0(%arg0: i32) -> (i32, i32) {
    %c0_i32 = arith.constant 0 : i32
    %c0_i32_0 = arith.constant 0 : i32
    return %arg0, %c0_i32 : i32, i32
  }
  func.func @transform_1(%arg0: i32) -> (i32, i32) {
    %c0_i32 = arith.constant 0 : i32
    %c0_i32_0 = arith.constant 0 : i32
    %c0_i32_1 = arith.constant 0 : i32
    return %c0_i32, %c0_i32_0 : i32, i32
  }
  func.func @transform_2(%arg0: i32) -> (i32, i32) {
    %c0_i32 = arith.constant 0 : i32
    %c0_i32_0 = arith.constant 0 : i32
    return %arg0, %c0_i32 : i32, i32
  }
}

</mosaic_0001>

<bundles_post_ra>
// kernel: tpu_custom_call.1
= control target key start
LH: loop header
LB: loop body
LE: loop exit
PB: predicated region body
PF: predicated region fallthrough
CT: control target
= control target key end

     0   :  { %7 = vsyncpa [#allocation3], 0  ;;  %s1161_s0 = inlined_call_operand.hbm [shape: f32[16,32], index: 0, kind: input, shape index: {}]   ;;  %s1162_s1 = inlined_call_operand.hbm [shape: f32[32,128], index: 1, kind: input, shape index: {}]   ;;  %s1163_s2 = inlined_call_operand.hbm [shape: f32[16,32], index: 2, kind: output, shape index: {}]  }
   0x1   :  { %8 = vsyncpa [#allocation6], 0 }
   0x2   :  { %9 = vsyncpa [#allocation4], 0  ;;  %s1023_s9 = smov [#allocation2]   ;;  %s951_s13 = scalar_lea.hbm %s1161_s0, 256 }
   0x3   :  { %s15_s10 = sshll.u32 %s1023_s9, 4  ;;  %p952_p0 = scmp.ne.s32.totalorder %s1161_s0, %s951_s13  ;;  %s16_s10 = int_to_ptr.vmem [resolvable:$true] %s15_s10 }
   0x4   :  { %p955_p1 = scmp.lt.u32.totalorder %s951_s13, %s1161_s0 }
   0x6   :  { %p957_p2 = pnand %p955_p1, %p952_p0 }
   0x8   :  { %960 = shalt.err (!%p957_p2)
}
   0x9   :  { %s961_s18 = scalar_lea.vmem %s16_s10, 256  ;;  %p966_p4 = scmp.lt.s32.totalorder %s16_s10, %s16_s10 }
   0xa   :  { %p962_p3 = scmp.ne.s32.totalorder %s16_s10, %s961_s18  ;;  %p967_p5 = scmp.lt.s32.totalorder %s961_s18, %s961_s18 }
   0xc   :  { %p968_p6 = por %p967_p5, %p966_p4 }
   0xe   :  { %p969_p7 = pnand %p968_p6, %p962_p3 }
  0x10   :  { %972 = shalt.err (!%p969_p7)
}
  0x11   :  { %s1024_s19 = smov 128   ;;  %s1025_s20 = smov 8  }
  0x12   :  { %21 = dma.hbm_to_vmem [thread:$0]  %s1161_s0, 256, %s16_s10, [#allocation3], %s1024_s19, %s1024_s19, %s1025_s20  }
  0x13   :  { %s1026_s23 = smov [#allocation5]   ;;  %s973_s27 = scalar_lea.hbm %s1162_s1, 512 }
  0x14   :  { %s27_s24 = sshll.u32 %s1026_s23, 4  ;;  %p974_p8 = scmp.ne.s32.totalorder %s1162_s1, %s973_s27  ;;  %s28_s24 = int_to_ptr.vmem [resolvable:$true] %s27_s24 }
  0x15   :  { %p977_p9 = scmp.lt.u32.totalorder %s973_s27, %s1162_s1 }
  0x17   :  { %p979_p10 = pnand %p977_p9, %p974_p8 }
  0x19   :  { %982 = shalt.err (!%p979_p10)
}
  0x1a   :  { %s983_s4 = scalar_lea.vmem %s28_s24, 512  ;;  %p988_p12 = scmp.lt.s32.totalorder %s28_s24, %s28_s24 }
  0x1b   :  { %p984_p11 = scmp.ne.s32.totalorder %s28_s24, %s983_s4  ;;  %p989_p13 = scmp.lt.s32.totalorder %s983_s4, %s983_s4 }
  0x1d   :  { %p990_p0 = por %p989_p13, %p988_p12 }
  0x1f   :  { %p991_p1 = pnand %p990_p0, %p984_p11 }
  0x21   :  { %994 = shalt.err (!%p991_p1)
}
  0x22   :  { %33 = dma.hbm_to_vmem [thread:$0]  %s1162_s1, 512, %s28_s24, [#allocation6], %s1024_s19, %s1024_s19, %s1025_s20  }
  0x23   :  { %1017 = dma.done.wait [#allocation3], 256  }
  0x24   :  { %1018 = vsyncadd [#allocation3], 4294967040 }
  0x25   :  { %1019 = dma.done.wait [#allocation6], 512  }
  0x26   :  { %1020 = vsyncadd [#allocation6], 4294966784  ;;  %vm46_vm0 = vcmask 261120   ;;  %v42_v0 = vld [vmem:[#allocation5] sm:$0xff]  ;;  %v43_v1 = vld [vmem:[#allocation5 + $0x8] sm:$0xff]  ;;  %v1027_v8 = vmov 0.0  }
  0x27   :  { %v44_v2 = vld [vmem:[#allocation5 + $0x10] sm:$0xff]  ;;  %v915_v3 = vpack.c.bf16 %v43_v1, %v42_v0  ;;  %v45_v4 = vld [vmem:[#allocation5 + $0x18] sm:$0xff]  ;;  %875 = vmatprep.subr.mxu1 %v1027_v8  ;;  %vm1028_vm1 = vmmov 0   ;;  %s1029_s1 = smov 96   ;;  %s1030_s6 = smov 112   ;;  %vm136_vm2 = vcmask 130048  }
  0x28   :  { %v40_v5 = vld [vmem:[#allocation2] sm:$0xff]  ;;  %v919_v6 = vpack.c.bf16 %v45_v4, %v44_v2  ;;  %v41_v7 = vld [vmem:[#allocation2 + $0x8] sm:$0xff]  ;;  %877 = vmatprep.mubr.msk.f32.mxu1 %vm1028_vm1, %v1027_v8  ;;  %vm439_vm3 = vcmask 64512   ;;  %s1031_s7 = smov 64   ;;  %s1032_s8 = smov 32  }
  0x29   :  { %872 = vmatprep.mubr.msk.f32.mxu0 %vm46_vm0, %v40_v5  ;;  %916 = vmatprep.subr.bf16.mxu0 %v915_v3  ;;  %s1033_s9 = smov 16   ;;  %s1034_s10 = smov [#allocation7]  }
  0x2a   :  { %918 = vmatpush3.bf16.msra.mxu0 %v915_v3  ;;  %s815_s11 = sshll.u32 %s1034_s10, 4  ;;  %s816_s11 = int_to_ptr.vmem [resolvable:$true] %s815_s11 }
  0x2b   :  { %920 = vmatprep.subr.bf16.mxu0 %v919_v6  ;;  %s995_s12 = scalar_lea.vmem %s816_s11, 256  ;;  %p1000_p3 = scmp.lt.s32.totalorder %s816_s11, %s816_s11 }
  0x2c   :  { %p996_p2 = scmp.ne.s32.totalorder %s816_s11, %s995_s12  ;;  %p1001_p4 = scmp.lt.s32.totalorder %s995_s12, %s995_s12 }
  0x2e   :  { %922 = vmatpush3.bf16.msra.mxu0 %v919_v6  ;;  %p1002_p5 = por %p1001_p4, %p1000_p3 }
  0x2f   :  { %885 = vmatprep.subr.mxu0 %v1027_v8 }
  0x30   :  { %p1003_p6 = pnand %p1002_p5, %p996_p2 }
  0x31   :  { %873 = vmatmul.mubr.msk.f32.vlgmr.msra.gmra.mrb[0].mxu0 %vm46_vm0, %v41_v7 }
  0x32   :  { %887 = vmatprep.mubr.msk.f32.mxu0 %vm1028_vm1, %v1027_v8 }
 0x104   :  { %v1088_v9 = vpop.f32.mrb[0].mxu0 }
 0x105   :  { %v1090_v10 = vpop.f32.mrb[1].mxu0 }
 0x106   :  { %134 = vrot.lane.b32.xlu1 %v1090_v10, %s1029_s1  ;;  %129 = vrot.lane.b32.xlu0 %v1090_v10, %s1030_s6 }
 0x10a   :  { %132 = vrot.lane.b32.xlu0 %v1088_v9, %s1030_s6 }
 0x178   :  { %v135_v11 = vpop.permute.xlu1 %134  ;;  %v130_v12 = vpop.permute.xlu0 %129 }
 0x179   :  { %876 = vmatpush3.xpose.msk.msra.mxu1 %vm136_vm2, %v135_v11  ;;  %211 = vrot.lane.b32.xlu1 %v130_v12, %s1029_s1 }
 0x17a   :  { %880 = vmatprep.subr.mxu1 %v1027_v8 }
 0x17c   :  { %878 = vmatmul.mubr.msk.f32.vlgmr.msra.gmra.mrb[0].mxu1 %vm136_vm2, %v1090_v10  ;;  %v133_v13 = vpop.permute.xlu0 %132 }
 0x17d   :  { %287 = vrot.lane.b32.xlu1 %v1088_v9, %s1029_s1  ;;  %363 = vrot.lane.b32.xlu0 %v133_v13, %s1029_s1 }
 0x17e   :  { %882 = vmatprep.mubr.msk.f32.mxu1 %vm1028_vm1, %v1027_v8 }
 0x1eb   :  { %v212_v14 = vpop.permute.xlu1 %211 }
 0x1ec   :  { %881 = vmatpush3.xpose.msk.msra.mxu1 %vm136_vm2, %v212_v14 }
 0x1ed   :  { %890 = vmatprep.subr.mxu1 %v1027_v8 }
 0x1ef   :  { %883 = vmatmul.mubr.msk.f32.vlgmr.msra.gmra.mrb[2].mxu1 %vm136_vm2, %v130_v12  ;;  %v288_v15 = vpop.permute.xlu1 %287  ;;  %v364_v16 = vpop.permute.xlu0 %363 }
 0x1f0   :  { %886 = vmatpush3.xpose.msk.msra.mxu0 %vm136_vm2, %v288_v15  ;;  %891 = vmatpush3.xpose.msk.msra.mxu1 %vm136_vm2, %v364_v16 }
 0x1f1   :  { %892 = vmatprep.mubr.msk.f32.mxu1 %vm1028_vm1, %v1027_v8  ;;  %900 = vmatprep.subr.mxu1 %v1027_v8 }
 0x1f2   :  { %895 = vmatprep.subr.mxu0 %v1027_v8 }
 0x1f3   :  { %888 = vmatmul.mubr.msk.f32.vlgmr.msra.gmra.mrb[2].mxu0 %vm136_vm2, %v1088_v9  ;;  %893 = vmatmul.mubr.msk.f32.vlgmr.msra.gmra.mrb[4].mxu1 %vm136_vm2, %v133_v13 }
 0x1f4   :  { %902 = vmatprep.mubr.msk.f32.mxu1 %vm1028_vm1, %v1027_v8  ;;  %897 = vmatprep.mubr.msk.f32.mxu0 %vm1028_vm1, %v1027_v8 }
 0x24f   :  { %v207_v17 = vpop.f32.mrb[0].mxu1 }
 0x250   :  { %v879_v18 = vpop.f32.mrb[1].mxu1  ;;  %v440_v26 = vsel %vm439_vm3, %v207_v17, -inf }
 0x2c2   :  { %v283_v19 = vpop.f32.mrb[2].mxu1 }
 0x2c3   :  { %v884_v20 = vpop.f32.mrb[3].mxu1  ;;  %v443_v21 = vsel %vm439_vm3, %v283_v19, -inf }
 0x2c4   :  { %444 = vmax.xlane.f32.xlu0 %v443_v21 }
 0x2c6   :  { %v359_v22 = vpop.f32.mrb[2].mxu0  ;;  %v435_v23 = vpop.f32.mrb[4].mxu1 }
 0x2c7   :  { %v889_v24 = vpop.f32.mrb[3].mxu0  ;;  %v894_v25 = vpop.f32.mrb[5].mxu1  ;;  %v449_v27 = vsel %vm439_vm3, %v435_v23, -inf  ;;  %v446_v28 = vsel %vm439_vm3, %v359_v22, -inf }
 0x2c8   :  { %441 = vmax.xlane.f32.xlu0 %v440_v26  ;;  %450 = vmax.xlane.f32.xlu1 %v449_v27 }
 0x2cc   :  { %447 = vmax.xlane.f32.xlu0 %v446_v28 }
 0x351   :  { %v445_v29 = vpop.xlane.xlu0 %444 }
 0x352   :  { %v453_v30 = vsub.f32 %v283_v19, %v445_v29 }
 0x354   :  { %v458_v31 = vmul.f32 1.442695, %v453_v30 }
 0x355   :  { %v451_v32 = vpop.xlane.xlu1 %450  ;;  %v442_v39 = vpop.xlane.xlu0 %441 }
 0x356   :  { %935 = vpow2.f32 %v458_v31  ;;  %v455_v33 = vsub.f32 %v435_v23, %v451_v32  ;;  %v452_v40 = vsub.f32 %v207_v17, %v442_v39 }
 0x358   :  { %v462_v34 = vmul.f32 1.442695, %v455_v33  ;;  %v456_v42 = vmul.f32 1.442695, %v452_v40 }
 0x359   :  { %v448_v41 = vpop.xlane.xlu0 %447 }
 0x35a   :  { %937 = vpow2.f32 %v462_v34  ;;  %v454_v43 = vsub.f32 %v359_v22, %v448_v41 }
 0x35b   :  { %939 = vpow2.f32 %v456_v42 }
 0x35c   :  { %v460_v44 = vmul.f32 1.442695, %v454_v43 }
 0x35e   :  { %941 = vpow2.f32 %v460_v44 }
 0x360   :  { %v936_v35 = vpop.eup %935 }
 0x361   :  { %v467_v36 = vsel %vm439_vm3, %v936_v35, 0.0 }
 0x362   :  { %468 = vadd.xlane.f32.xlu1 %v467_v36 }
 0x364   :  { %v938_v37 = vpop.eup %937 }
 0x365   :  { %v473_v38 = vsel %vm439_vm3, %v938_v37, 0.0  ;;  %v940_v45 = vpop.eup %939 }
 0x366   :  { %474 = vadd.xlane.f32.xlu0 %v473_v38  ;;  %v464_v46 = vsel %vm439_vm3, %v940_v45, 0.0 }
 0x368   :  { %v942_v47 = vpop.eup %941 }
 0x369   :  { %v470_v48 = vsel %vm439_vm3, %v942_v47, 0.0 }
 0x373   :  { %560 = vrot.lane.b32.xlu1 %v130_v12, %s1031_s7 }
 0x37c   :  { %712 = vrot.lane.b32.xlu0 %v133_v13, %s1031_s7 }
 0x397   :  { %465 = vadd.xlane.f32.xlu1 %v464_v46 }
 0x39b   :  { %471 = vadd.xlane.f32.xlu0 %v470_v48 }
 0x3a8   :  { %484 = vrot.lane.b32.xlu1 %v1090_v10, %s1031_s7 }
 0x3b1   :  { %636 = vrot.lane.b32.xlu0 %v1088_v9, %s1031_s7 }
 0x3b5   :  { %798 = vrot.lane.b32.xlu0 %v1090_v10, %s1032_s8 }
 0x3ef   :  { %v469_v49 = vpop.xlane.xlu1 %468 }
 0x3f0   :  { %943 = vrcp.f32 %v469_v49 }
 0x3f3   :  { %v561_v50 = vpop.permute.xlu1 %560  ;;  %v475_v51 = vpop.xlane.xlu0 %474 }
 0x3f4   :  { %945 = vrcp.f32 %v475_v51  ;;  %901 = vmatpush3.msra.mxu1 %v561_v50 }
 0x3f5   :  { %910 = vmatprep.subr.mxu1 %v1027_v8 }
 0x3f7   :  { %v713_v54 = vpop.permute.xlu0 %712 }
 0x3fa   :  { %v944_v52 = vpop.eup %943 }
 0x3fb   :  { %v481_v53 = vmul.f32 %v944_v52, %v936_v35 }
 0x3fd   :  { %903 = vmatmul.mubr.msk.f32.vlgmr.msra.gmra.mrb[6].mxu1 %vm439_vm3, %v481_v53 }
 0x3fe   :  { %v946_v55 = vpop.eup %945  ;;  %911 = vmatpush3.msra.mxu1 %v713_v54  ;;  %912 = vmatprep.mubr.msk.f32.mxu1 %vm1028_vm1, %v1027_v8 }
 0x3ff   :  { %v483_v56 = vmul.f32 %v946_v55, %v938_v37 }
 0x401   :  { %913 = vmatmul.mubr.msk.f32.vlgmr.msra.gmra.mrb[8].mxu1 %vm439_vm3, %v483_v56 }
 0x424   :  { %v466_v57 = vpop.xlane.xlu1 %465 }
 0x425   :  { %947 = vrcp.f32 %v466_v57 }
 0x428   :  { %v485_v58 = vpop.permute.xlu1 %484  ;;  %v472_v59 = vpop.xlane.xlu0 %471 }
 0x429   :  { %949 = vrcp.f32 %v472_v59  ;;  %896 = vmatpush3.msra.mxu0 %v485_v58 }
 0x42a   :  { %905 = vmatprep.subr.mxu0 %v1027_v8 }
 0x42c   :  { %v637_v62 = vpop.permute.xlu0 %636 }
 0x42f   :  { %v948_v60 = vpop.eup %947 }
 0x430   :  { %v480_v61 = vmul.f32 %v948_v60, %v940_v45  ;;  %v799_v12 = vpop.permute.xlu0 %798 }
 0x432   :  { %898 = vmatmul.mubr.msk.f32.vlgmr.msra.gmra.mrb[4].mxu0 %vm439_vm3, %v480_v61 }
 0x433   :  { %v950_v63 = vpop.eup %949  ;;  %906 = vmatpush3.msra.mxu0 %v637_v62  ;;  %907 = vmatprep.mubr.msk.f32.mxu0 %vm1028_vm1, %v1027_v8 }
 0x434   :  { %v482_v0 = vmul.f32 %v950_v63, %v942_v47 }
 0x436   :  { %908 = vmatmul.mubr.msk.f32.vlgmr.msra.gmra.mrb[6].mxu0 %vm439_vm3, %v482_v0 }
 0x4d0   :  { %v632_v1 = vpop.f32.mrb[6].mxu1 }
 0x4d1   :  { %v904_v2 = vpop.f32.mrb[7].mxu1  ;;  %789 = vrot.lane.b32.xlu1 %v632_v1, %s1033_s9 }
 0x4d4   :  { %v784_v3 = vpop.f32.mrb[8].mxu1 }
 0x4d5   :  { %794 = vrot.lane.b32.xlu1 %v784_v3, %s1033_s9  ;;  %v914_v4 = vpop.f32.mrb[9].mxu1 }
 0x4d9   :  { %800 = vrot.lane.b32.xlu1 %v1088_v9, %s1032_s8 }
 0x505   :  { %v556_v5 = vpop.f32.mrb[4].mxu0 }
 0x506   :  { %v899_v6 = vpop.f32.mrb[5].mxu0 }
 0x509   :  { %v708_v7 = vpop.f32.mrb[6].mxu0 }
 0x50a   :  { %v909_v10 = vpop.f32.mrb[7].mxu0 }
 0x543   :  { %v790_v11 = vpop.permute.xlu1 %789 }
 0x544   :  { %v792_v8 = vsel %vm136_vm2, %v556_v5, %v790_v11 }
 0x545   :  { %v804_v13 = vadd.f32 %v799_v12, %v792_v8 }
 0x547   :  { %v806_v14 = vmax.f32 %v804_v13, 0.0  ;;  %v795_v15 = vpop.permute.xlu1 %794 }
 0x548   :  { %v797_v17 = vsel %vm136_vm2, %v708_v7, %v795_v15 }
 0x549   :  { %808 = vst.msk [vmem:[#allocation7] sm:$0xff] %vm46_vm0, %v806_v14 }
 0x54b   :  { %v801_v16 = vpop.permute.xlu1 %800 }
 0x54c   :  { %v805_v18 = vadd.f32 %v801_v16, %v797_v17 }
 0x54e   :  { %v807_v9 = vmax.f32 %v805_v18, 0.0 }
 0x550   :  { %809 = vst.msk [vmem:[#allocation7 + $0x8] sm:$0xff] %vm46_vm0, %v807_v9 }
 0x551   :  { %1006 = shalt.err (!%p1003_p6)
}
 0x552   :  { %s1007_s15 = scalar_lea.hbm %s1163_s2, 256 }
 0x553   :  { %p1008_p7 = scmp.ne.s32.totalorder %s1163_s2, %s1007_s15  ;;  %p1011_p8 = scmp.lt.u32.totalorder %s1007_s15, %s1163_s2 }
 0x555   :  { %p1013_p9 = pnand %p1011_p8, %p1008_p7 }
 0x557   :  { %1016 = shalt.err (!%p1013_p9)
}
 0x558   :  { %821 = dma.vmem_to_hbm [thread:$0]  %s816_s11, 256, %s1163_s2, [#allocation4], %s1024_s19, %s1024_s19, %s1025_s20  }
 0x559   :  { %1021 = dma.done.wait [#allocation4], 256  }
 0x55a   :  { %1022 = vsyncadd [#allocation4], 4294967040 }
 0x55b   :  { %825 = vsyncpa [#allocation3], 1 }
 0x55c   :  { %826 = vsyncpa [#allocation6], 1 }
 0x55d   :  { %827 = vsyncpa [#allocation4], 1 }

</bundles_post_ra>
